<compile_context>
chip_gen: v6e
topology: v6e:2x2x1
jax: 0.10.0
libtpu: 0.0.40
codegen_flags: <defaults>
</compile_context>

<pallas_src>
import jax
import jax.numpy as jnp
from jax.experimental import pallas as pl
from jax.experimental.pallas import tpu as pltpu


def _channel_attn_kernel(x_ref, w1_ref, w2_ref, o_ref):
    """One grid step over a (1, C, TT, HW) block of the (B, C, T, H*W) tensor."""
    x = x_ref[0]                                        # (C, TT, HW), native dtype

    # Adaptive avg / max pooling over the flattened spatial (lane) axis.
    # Mean accumulates in f32; max is exact in the native dtype.  No block-sized
    # fp32 temp of x is materialized.
    avg = jnp.mean(x, axis=-1, dtype=jnp.float32)       # (C, TT) f32
    mx = jnp.max(x, axis=-1).astype(jnp.float32)        # (C, TT) f32

    w1 = w1_ref[...]                                    # (Cr, C), native dtype (MXU path)
    w2 = w2_ref[...]                                    # (C, Cr)

    # Shared MLP on both pooled paths; second layer is linear, so fold the add:
    # W2·relu(W1·avg) + W2·relu(W1·max) == W2·(relu(W1·avg)+relu(W1·max)).
    h_avg = jnp.maximum(
        jnp.dot(w1, avg.astype(w1.dtype), preferred_element_type=jnp.float32), 0.0)
    h_max = jnp.maximum(
        jnp.dot(w1, mx.astype(w1.dtype), preferred_element_type=jnp.float32), 0.0)
    h = (h_avg + h_max).astype(w2.dtype)                # (Cr, TT)
    logits = jnp.dot(w2, h, preferred_element_type=jnp.float32)   # (C, TT) f32

    gate = jax.nn.sigmoid(logits).astype(o_ref.dtype)   # (C, TT), single cast
    o_ref[0] = x * gate[:, :, None]                     # native-dtype multiply + store


def _sublane_multiple(dtype):
    # 8 for 4-byte, 16 for 2-byte, 32 for 1-byte dtypes (sub-32-bit packs sublanes).
    return max(8, 32 // jnp.dtype(dtype).itemsize)


def _vmem_capacity_bytes():
    try:
        return int(pltpu.get_tpu_info().vmem_capacity_bytes)
    except Exception:
        return 64 << 20   # conservative default: v7x per-TensorCore VMEM


def _choose_t_tile(T, bytes_per_t, budget_bytes, dtype, min_tiles=1):
    """Pick TT (frames per grid step).

    Layout-legal TT: divides T and is a multiple of 8 (sublane constraint on the
    second-to-last block dim), or TT == T (full extent is always legal).  Prefers
    full sublane packs for the dtype (16 for bf16, 32 for int8/fp8).  Picks the
    largest legal tile that (a) fits `budget_bytes` and (b) leaves >= `min_tiles`
    T-tiles; relaxes (b) then (a).  Never falls back to an oversized full-T block:
    if nothing fits the budget it returns the smallest legal tile and the caller
    raises vmem_limit_bytes accordingly.
    """
    step = _sublane_multiple(dtype)
    divisors = [d for d in range(1, T + 1) if T % d == 0]
    legal = [d for d in divisors if d % 8 == 0 or d == T]
    packed = [d for d in legal if d % step == 0 or d == T]

    def best(cands, enforce_min_tiles):
        ok = [d for d in cands
              if d * bytes_per_t <= budget_bytes
              and (not enforce_min_tiles or T // d >= min_tiles)]
        return max(ok) if ok else None

    for cands, enforce in ((packed, True), (legal, True), (packed, False), (legal, False)):
        tt = best(cands, enforce)
        if tt is not None:
            return tt
    return min(legal)


def channel_attention(x, w1, w2):
    """x: (B, C, T, H, W); w1: (C//sq_r, C); w2: (C, C//sq_r). Returns x * gate."""
    B, C, T, H, W = x.shape
    Cr = w1.shape[0]
    HW = H * W
    itemsize = jnp.dtype(x.dtype).itemsize
    w_itemsize = jnp.dtype(w1.dtype).itemsize

    # Free reshape (contiguous collapse of the trailing H, W dims). No transpose.
    xr = x.reshape(B, C, T, HW)

    cap = _vmem_capacity_bytes()
    # Per-step footprint ~= 2x in-block + 2x out-block (double buffering) + ~1 block
    # of in-kernel temps => size a single block at ~(cap/2)/5.
    block_budget = max(1 << 20, (cap // 2) // 5)

    # Ask for >=2 grid steps when B == 1 so dual-TC parts can shard the grid.
    min_t_tiles = 2 if B < 2 else 1
    TT = _choose_t_tile(T, C * HW * itemsize, block_budget, x.dtype, min_t_tiles)
    nT = T // TT

    block_bytes = C * TT * HW * itemsize
    weight_bytes = 2 * C * Cr * w_itemsize
    # Real scoped-VMEM need: double-buffered in/out + weights + temp slack.  If this
    # exceeds ~90% of physical VMEM (huge C*HW), a two-pass path would be required.
    needed = 5 * block_bytes + 4 * weight_bytes + (4 << 20)
    vmem_limit = int(min(max(needed, 32 << 20), int(0.9 * cap)))

    bytes_accessed = 2 * B * C * T * HW * itemsize + 2 * C * Cr * w_itemsize
    flops = 3 * B * C * T * HW + 6 * B * T * C * Cr
    transcendentals = B * C * T

    out = pl.pallas_call(
        _channel_attn_kernel,
        out_shape=jax.ShapeDtypeStruct((B, C, T, HW), x.dtype),
        grid_spec=pltpu.PrefetchScalarGridSpec(
            num_scalar_prefetch=0,
            grid=(B, nT),
            in_specs=[
                pl.BlockSpec((1, C, TT, HW), lambda b, t: (b, 0, t, 0)),
                pl.BlockSpec((Cr, C), lambda b, t: (0, 0)),
                pl.BlockSpec((C, Cr), lambda b, t: (0, 0)),
            ],
            out_specs=pl.BlockSpec((1, C, TT, HW), lambda b, t: (b, 0, t, 0)),
        ),
        compiler_params=pltpu.CompilerParams(
            dimension_semantics=("parallel", "parallel"),
            vmem_limit_bytes=vmem_limit,
        ),
        cost_estimate=pl.CostEstimate(
            flops=flops,
            transcendentals=transcendentals,
            bytes_accessed=bytes_accessed,
        ),
    )(xr, w1, w2)

    # Free reshape back to the original 5-D layout.
    return out.reshape(B, C, T, H, W)


def _reference(x, w1, w2):
    # Pure-JAX reference mirroring the PyTorch forward exactly.
    B, C, T, H, W = x.shape
    xr = jnp.transpose(x, (0, 2, 1, 3, 4)).reshape(B * T, C, H * W)
    avg = jnp.mean(xr, axis=2)  # (N, C)
    mx = jnp.max(xr, axis=2)    # (N, C)

    def mlp(v):  # v: (N, C)
        h = jnp.maximum(v @ w1.T, 0.0)  # (N, Cr)
        return h @ w2.T                  # (N, C)

    gate = jax.nn.sigmoid(mlp(avg) + mlp(mx))  # (N, C)
    gate = jnp.transpose(gate.reshape(B, T, C), (0, 2, 1))[..., None, None]
    return x * gate


if __name__ == "__main__":
    key = jax.random.PRNGKey(0)
    k_x, k_w1, k_w2 = jax.random.split(key, 3)

    # Small shapes consistent with the module's forward.
    B, C, T, H, W = 2, 8, 4, 16, 16
    sq_r = 2
    Cr = C // sq_r

    x = jax.random.normal(k_x, (B, C, T, H, W), dtype=jnp.float32)
    # Deterministic synthetic weights for the two bias-free 1x1 convs.
    w1 = 0.3 * jax.random.normal(k_w1, (Cr, C), dtype=jnp.float32)  # C -> C//sq_r
    w2 = 0.3 * jax.random.normal(k_w2, (C, Cr), dtype=jnp.float32)  # C//sq_r -> C

    y = channel_attention(x, w1, w2)
    jax.block_until_ready(y)

    y_ref = _reference(x, w1, w2)
    assert y.shape == x.shape
    assert jnp.allclose(y, y_ref, atol=1e-5, rtol=1e-5)

    print("KERNEL_OK")
</pallas_src>

<mosaic_0001>
module attributes {stable_mosaic.version = 11 : i64} {
  func.func @_channel_attn_kernel(%arg0: i32, %arg1: i32, %arg2: memref<1x8x4x256xf32, #tpu.memory_space<vmem>>, %arg3: memref<4x8xf32, #tpu.memory_space<vmem>>, %arg4: memref<8x4xf32, #tpu.memory_space<vmem>>, %arg5: memref<1x8x4x256xf32, #tpu.memory_space<vmem>>) attributes {dimension_semantics = [#tpu.dimension_semantics<parallel>, #tpu.dimension_semantics<parallel>], iteration_bounds = array<i64: 2, 1>, scalar_prefetch = 0 : i64, scratch_operands = 0 : i64, tpu.core_type = #tpu.core_type<tc>, window_params = [{transform_indices = @transform_0, window_bounds = array<i64: 1, 8, 4, 256>}, {pipeline_mode = #tpu.pipeline_mode<synchronous>, transform_indices = @transform_1, window_bounds = array<i64: 4, 8>}, {pipeline_mode = #tpu.pipeline_mode<synchronous>, transform_indices = @transform_2, window_bounds = array<i64: 8, 4>}, {transform_indices = @transform_3, window_bounds = array<i64: 1, 8, 4, 256>}]} {
    %c0 = arith.constant 0 : index
    %c0_0 = arith.constant 0 : index
    %c0_1 = arith.constant 0 : index
    %c0_2 = arith.constant 0 : index
    %0 = vector.load %arg2[%c0, %c0_0, %c0_1, %c0_2] : memref<1x8x4x256xf32, #tpu.memory_space<vmem>>, vector<1x8x4x256xf32>
    %1 = vector.shape_cast %0 : vector<1x8x4x256xf32> to vector<8x4x256xf32>
    %cst = arith.constant dense<0.000000e+00> : vector<8x4xf32>
    %2 = vector.multi_reduction <add>, %1, %cst [2] : vector<8x4x256xf32> to vector<8x4xf32>
    %cst_3 = arith.constant 2.560000e+02 : f32
    %3 = vector.broadcast %cst_3 : f32 to vector<8x4xf32>
    %4 = arith.divf %2, %3 : vector<8x4xf32>
    %cst_4 = arith.constant dense<0xFF800000> : vector<8x4xf32>
    %5 = vector.multi_reduction <maximumf>, %1, %cst_4 [2] : vector<8x4x256xf32> to vector<8x4xf32>
    %c0_5 = arith.constant 0 : index
    %c0_6 = arith.constant 0 : index
    %6 = vector.load %arg3[%c0_5, %c0_6] : memref<4x8xf32, #tpu.memory_space<vmem>>, vector<4x8xf32>
    %c0_7 = arith.constant 0 : index
    %c0_8 = arith.constant 0 : index
    %7 = vector.load %arg4[%c0_7, %c0_8] : memref<8x4xf32, #tpu.memory_space<vmem>>, vector<8x4xf32>
    %cst_9 = arith.constant dense<0.000000e+00> : vector<4x4xf32>
    %8 = tpu.matmul %6, %4, %cst_9 {dimension_numbers = #tpu.dot_dimension_numbers<[1], [0], [0], [1], [0, 0, 1, 1], [], []>} : vector<4x8xf32>, vector<8x4xf32>, vector<4x4xf32> -> vector<4x4xf32>
    %cst_10 = arith.constant 0.000000e+00 : f32
    %9 = vector.broadcast %cst_10 : f32 to vector<4x4xf32>
    %10 = arith.maximumf %8, %9 : vector<4x4xf32>
    %cst_11 = arith.constant dense<0.000000e+00> : vector<4x4xf32>
    %11 = tpu.matmul %6, %5, %cst_11 {dimension_numbers = #tpu.dot_dimension_numbers<[1], [0], [0], [1], [0, 0, 1, 1], [], []>} : vector<4x8xf32>, vector<8x4xf32>, vector<4x4xf32> -> vector<4x4xf32>
    %cst_12 = arith.constant 0.000000e+00 : f32
    %12 = vector.broadcast %cst_12 : f32 to vector<4x4xf32>
    %13 = arith.maximumf %11, %12 : vector<4x4xf32>
    %14 = arith.addf %10, %13 : vector<4x4xf32>
    %cst_13 = arith.constant dense<0.000000e+00> : vector<8x4xf32>
    %15 = tpu.matmul %7, %14, %cst_13 {dimension_numbers = #tpu.dot_dimension_numbers<[1], [0], [0], [1], [0, 0, 1, 1], [], []>} : vector<8x4xf32>, vector<4x4xf32>, vector<8x4xf32> -> vector<8x4xf32>
    %16 = arith.negf %15 : vector<8x4xf32>
    %17 = math.exp %16 : vector<8x4xf32>
    %cst_14 = arith.constant 1.000000e+00 : f32
    %18 = vector.broadcast %cst_14 : f32 to vector<8x4xf32>
    %19 = arith.addf %18, %17 : vector<8x4xf32>
    %20 = arith.divf %18, %19 : vector<8x4xf32>
    %21 = vector.shape_cast %20 : vector<8x4xf32> to vector<8x4x1xf32>
    %22 = vector.broadcast %21 : vector<8x4x1xf32> to vector<8x4x256xf32>
    %23 = arith.mulf %1, %22 : vector<8x4x256xf32>
    %c0_15 = arith.constant 0 : index
    %c0_16 = arith.constant 0 : index
    %c0_17 = arith.constant 0 : index
    %c0_18 = arith.constant 0 : index
    %24 = vector.load %arg5[%c0_15, %c0_16, %c0_17, %c0_18] : memref<1x8x4x256xf32, #tpu.memory_space<vmem>>, vector<1x8x4x256xf32>
    %25 = vector.shape_cast %24 : vector<1x8x4x256xf32> to vector<8x4x256xf32>
    %26 = vector.shape_cast %23 : vector<8x4x256xf32> to vector<1x8x4x256xf32>
    tpu.vector_store %arg5[%c0_15, %c0_16, %c0_17, %c0_18], %26 {strides = array<i32>} : memref<1x8x4x256xf32, #tpu.memory_space<vmem>>, vector<1x8x4x256xf32>,
    return
  }
  func.func @transform_0(%arg0: i32, %arg1: i32) -> (i32, i32, i32, i32) {
    %c0_i32 = arith.constant 0 : i32
    %c0_i32_0 = arith.constant 0 : i32
    %c0_i32_1 = arith.constant 0 : i32
    return %arg0, %c0_i32, %arg1, %c0_i32_0 : i32, i32, i32, i32
  }
  func.func @transform_1(%arg0: i32, %arg1: i32) -> (i32, i32) {
    %c0_i32 = arith.constant 0 : i32
    %c0_i32_0 = arith.constant 0 : i32
    %c0_i32_1 = arith.constant 0 : i32
    return %c0_i32, %c0_i32_0 : i32, i32
  }
  func.func @transform_2(%arg0: i32, %arg1: i32) -> (i32, i32) {
    %c0_i32 = arith.constant 0 : i32
    %c0_i32_0 = arith.constant 0 : i32
    %c0_i32_1 = arith.constant 0 : i32
    return %c0_i32, %c0_i32_0 : i32, i32
  }
  func.func @transform_3(%arg0: i32, %arg1: i32) -> (i32, i32, i32, i32) {
    %c0_i32 = arith.constant 0 : i32
    %c0_i32_0 = arith.constant 0 : i32
    %c0_i32_1 = arith.constant 0 : i32
    return %arg0, %c0_i32, %arg1, %c0_i32_0 : i32, i32, i32, i32
  }
}

</mosaic_0001>

<bundles_post_ra>
// kernel: tpu_custom_call.1
= control target key start
LH: loop header
LB: loop body
LE: loop exit
PB: predicated region body
PF: predicated region fallthrough
CT: control target
= control target key end

     0   :  { %8 = vsyncpa [#allocation3], 0  ;;  %s1466_s0 = inlined_call_operand.hbm [shape: f32[2,8,4,256], index: 0, kind: input, shape index: {}]   ;;  %s1467_s1 = inlined_call_operand.vmem [shape: f32[4,8], index: 1, kind: input, shape index: {}]   ;;  %s1468_s2 = inlined_call_operand.vmem [shape: f32[8,4], index: 2, kind: input, shape index: {}]   ;;  %s1469_s3 = inlined_call_operand.hbm [shape: f32[2,8,4,256], index: 3, kind: output, shape index: {}]  }
   0x1   :  { %10 = vsyncpa [#allocation3 + $0x1], 0 }
   0x2   :  { %11 = vsyncpa [#allocation4], 0 }
   0x3   :  { %13 = vsyncpa [#allocation4 + $0x1], 0  ;;  %s1176_s12 = smov 0   ;;  %s1178_s13 = smov 0  }
   0x4   :  { %s1180_s14 = smov 0   ;;  %s1182_s15 = smov 0  }
   0x5   :  { %s1184_s16 = smov 0   ;;  %s1186_s17 = smov 0  }
   0x6 LB: > { %s913_s18 = sadd.s32 4294967295, %s1145_s17   ;;  %s914_s19 = sadd.s32 4294967294, %s1145_s17   ;;  %s1145_s17 = sphi %s1186_s17, %s19_s17   ;;  %s1141_s16 = sphi %s1184_s16, %s1480_s16   ;;  %s1137_s15 = sphi %s1182_s15, %s1479_s15   ;;  %s1133_s14 = sphi %s1180_s14, %s1478_s14   ;;  %s1129_s13 = sphi %s1178_s13, %s1477_s13   ;;  %s1125_s12 = sphi %s1176_s12, %s1476_s12  }
   0x7   : > { %s31_s20 = sadd.s32 1, %s1141_s16  ;;  %s40_s21 = sadd.s32 1, %s1133_s14 }
   0x8   : > { %p33_p0 = scmp.ge.s32.totalorder %s31_s20, 2  ;;  %p47_p1 = scmp.ne.s32.totalorder %s1133_s14, %s1129_s13 }
   0x9   : > { %p48_p2 = scmp.eq.s32.totalorder %s1145_s17, 0  ;;  %p53_p3 = scmp.ne.s32.totalorder %s1129_s13, %s1125_s12 }
   0xa   : > { %s1482_s20 = smov (%p33_p0, %s31_s20), 0  ;;  %p54_p5 = scmp.eq.s32.totalorder %s913_s18, 0 }
   0xb   : > { %p1217_p4 = por %p48_p2, %p47_p1  ;;  %s35_s23 = ssub.s32 %s1141_s16, %s1482_s20 }
   0xc   : > { %p121_p6 = scmp.eq.s32.totalorder %s913_s18, 1  ;;  %p38_p7 = scmp.eq.s32.totalorder %s35_s23, 0 }
   0xd   : > { %p1223_p8 = por %p54_p5, %p53_p3  ;;  %p127_p10 = scmp.eq.s32.totalorder %s914_s19, 1 }
   0xe   : > { %p1227_p9 = por %p121_p6, %p47_p1  ;;  %p968_p13 = scmp.lt.s32.totalorder %s1145_s17, 2 }
   0xf   : > { %s1232_s26 = scalar_select %p38_p7, %s1133_s14, %s40_s21  }
  0x10   : > { %p1234_p11 = por %p127_p10, %p53_p3  ;;  %s153_s28 = sand.u32 1, %s1133_s14  }
  0x11   : > { %s917_s29 = sshll.u32 %s153_s28, 6  ;;  %s933_s30 = sshll.u32 %s1141_s16, 10 }
  0x12   : > { %s165_s6 = scalar_lea.hbm %s1466_s0, %s933_s30  ;;  %s157_s7 = scalar_lea.vmem [#allocation2], %s917_s29 }
  0x13   : > { %s166_s8 = sshll.u32 %s157_s7, 4  ;;  %p1247_p0 = pnand %p968_p13, %p1217_p4  ;;  %s167_s8 = int_to_ptr.vmem [resolvable:$true] %s166_s8 }
  0x14   : > { %p920_p1 = scmp.ge.s32.totalorder %s1145_s17, 1  ;;  %s154_s10 = scalar_lea.sflag [#allocation3], %s153_s28 }
  0x15   : > { %p1039_p2 = pneg %p1247_p0  ;;  %s1050_s11 = scalar_lea.vmem %s167_s8, 1024 }
  0x16   : > { %p1051_p3 = scmp.ne.s32.totalorder %s167_s8, %s1050_s11  ;;  %s1147_s18 = smov [#allocation2]  }
  0x17   : > { %s1055_s19 = sshll.u32 %s1147_s18, 4  ;;  %s1056_s19 = int_to_ptr.vmem [resolvable:$false] %s1055_s19 }
  0x18   : > { %p1053_p5 = pnand %p1051_p3, %p1039_p2  ;;  %s1057_s21 = scalar_lea.vmem %s1056_s19, 2048 }
  0x19   : > { %p1058_p7 = scmp.lt.s32.totalorder %s167_s8, %s1056_s19  ;;  %p1059_p10 = scmp.lt.s32.totalorder %s1057_s21, %s1050_s11 }
  0x1a   : > { %p1054_p6 = pneg %p1053_p5 }
  0x1b   : > { %p1060_p12 = por %p1059_p10, %p1058_p7 }
  0x1d   : > { %p1061_p4 = pnand %p1060_p12, %p1054_p6 }
  0x1f   : > { %1064 = shalt.err (!%p1061_p4)
}
  0x20   : > { %s1148_s22 = smov 128   ;;  %s1149_s23 = smov 8  }
  0x21   : > { %963 = dma.hbm_to_vmem [thread:$0]  (!%p1247_p0), %s165_s6, 1024, %s167_s8, %s154_s10, %s1148_s22, %s1148_s22, %s1149_s23  }
  0x22   : > { %p174_p13 = scmp.lt.s32.totalorder %s1145_s17, 3 }
  0x24   : > { %p175_p2 = pnand %p920_p1, %p174_p13 }
  0x25   : > { %s1260_s28 = sand.u32 (!%p175_p2), 1, %s1129_s13  }
  0x26   : > { %178 = sbr.rel (%p175_p2) target bundleno = 795 (0x31b), region = 32  ;;  %s921_s29 = sshll.u32 (!%p175_p2), %s1260_s28, 6 }
  0x27   : > { %s181_s30 = scalar_lea.sflag (!%p175_p2), [#allocation3], %s1260_s28  ;;  %s1266_s4 = scalar_lea.vmem (!%p175_p2), [#allocation2], %s921_s29 }
  0x2b   : > { %1116 = dma.done.wait (%p1223_p8), %s181_s30, 1024  }
  0x2c   : > { %1118 = vsyncadd (%p1223_p8), %s181_s30, 4294966272  ;;  %vm239_vm0 = vcmask 1043456   ;;  %v1273_v0 = vld [vmem:[%s1266_s4 + $0x10] sm:$0xff]  ;;  %v1276_v1 = vld [vmem:[%s1266_s4] sm:$0xff]  ;;  %vm1151_vm1 = vmmov 0   ;;  %vm373_vm2 = vcmask 1041409  }
  0x2d   : > { %v1279_v2 = vld [vmem:[%s1266_s4 + $0x18] sm:$0xff]  ;;  %v225_v3 = vcombine.high %v1273_v0, %v1273_v0  ;;  %v250_v4 = vsel %vm239_vm0, %v1273_v0, 0.0  ;;  %v223_v5 = vcombine.high %v1276_v1, %v1276_v1  ;;  %v240_v6 = vsel %vm239_vm0, %v1276_v1, 0.0  ;;  %v1290_v7 = vld [vmem:[%s1266_s4 + $0x8] sm:$0xff]  ;;  %v1305_v18 = vld [vmem:[%s1266_s4 + $0x20] sm:$0xff]  ;;  %s206_s8 = scalar_lea.vmem [#allocation5], %s921_s29 }
  0x2e   : > { %v226_v8 = vcombine.high %v1279_v2, %v1279_v2  ;;  %v224_v9 = vcombine.high %v1290_v7, %v1290_v7  ;;  %v255_v12 = vsel %vm239_vm0, %v1279_v2, 0.0  ;;  %v245_v13 = vsel %vm239_vm0, %v1290_v7, 0.0  ;;  %v1316_v26 = vld [vmem:[%s1266_s4 + $0x28] sm:$0xff]  ;;  %v1327_v34 = vld [vmem:[%s1266_s4 + $0x30] sm:$0xff]  ;;  %v1338_v42 = vld [vmem:[%s1266_s4 + $0x38] sm:$0xff]  ;;  %s826_s9 = sshll.u32 %s206_s8, 4  ;;  %s1412_s9 = int_to_ptr.vmem [resolvable:$true] %s826_s9 }
  0x2f   : > { %v251_v10 = vsel %vm239_vm0, %v225_v3, 0.0  ;;  %v241_v11 = vsel %vm239_vm0, %v223_v5, 0.0  ;;  %v294_v21 = vsel %vm239_vm0, %v1290_v7, -inf  ;;  %v289_v23 = vsel %vm239_vm0, %v1276_v1, -inf  ;;  %s934_s10 = sshll.u32 %s1137_s15, 10  ;;  %s811_s21 = scalar_lea.sflag [#allocation4], %s1260_s28 }
  0x30   : > { %v252_v14 = vadd.f32 %v251_v10, %v250_v4  ;;  %v242_v15 = vadd.f32 %v241_v11, %v240_v6  ;;  %v256_v16 = vsel %vm239_vm0, %v226_v8, 0.0  ;;  %v246_v17 = vsel %vm239_vm0, %v224_v9, 0.0  ;;  %s1417_s19 = scalar_lea.hbm %s1469_s3, %s934_s10  ;;  %s1065_s22 = scalar_lea.vmem %s1412_s9, 1024 }
  0x31   : > { %v257_v19 = vadd.f32 %v256_v16, %v255_v12  ;;  %v247_v20 = vadd.f32 %v246_v17, %v245_v13  ;;  %v295_v22 = vsel %vm239_vm0, %v224_v9, -inf  ;;  %v290_v24 = vsel %vm239_vm0, %v223_v5, -inf  ;;  %p1066_p8 = scmp.ne.s32.totalorder %s1412_s9, %s1065_s22  ;;  %s1153_s15 = smov [#allocation5]  }
  0x32   : > { %253 = vadd.xlane.f32.xlu1 %v252_v14  ;;  %243 = vadd.xlane.f32.xlu0 %v242_v15  ;;  %v227_v25 = vcombine.high %v1305_v18, %v1305_v18  ;;  %v296_v27 = vmax.f32 %v294_v21, %v295_v22  ;;  %v291_v28 = vmax.f32 %v289_v23, %v290_v24  ;;  %v299_v29 = vsel %vm239_vm0, %v1273_v0, -inf  ;;  %s1069_s23 = sshll.u32 %s1153_s15, 4  ;;  %s1070_s23 = int_to_ptr.vmem [resolvable:$false] %s1069_s23 }
  0x33   : > { %v300_v30 = vsel %vm239_vm0, %v225_v3, -inf  ;;  %v260_v31 = vsel %vm239_vm0, %v1305_v18, 0.0  ;;  %v228_v33 = vcombine.high %v1316_v26, %v1316_v26  ;;  %v304_v37 = vsel %vm239_vm0, %v1279_v2, -inf  ;;  %p1067_p12 = pnand %p1066_p8, %p1227_p9  ;;  %s1071_s29 = scalar_lea.vmem %s1070_s23, 2048 }
  0x34   : > { %v261_v32 = vsel %vm239_vm0, %v227_v25, 0.0  ;;  %v301_v35 = vmax.f32 %v299_v29, %v300_v30  ;;  %v305_v38 = vsel %vm239_vm0, %v226_v8, -inf  ;;  %v265_v39 = vsel %vm239_vm0, %v1316_v26, 0.0  ;;  %p1072_p1 = scmp.lt.s32.totalorder %s1412_s9, %s1070_s23  ;;  %p1073_p3 = scmp.lt.s32.totalorder %s1071_s29, %s1065_s22 }
  0x35   : > { %v262_v36 = vadd.f32 %v261_v32, %v260_v31  ;;  %v266_v40 = vsel %vm239_vm0, %v228_v33, 0.0  ;;  %v229_v41 = vcombine.high %v1327_v34, %v1327_v34  ;;  %v306_v43 = vmax.f32 %v304_v37, %v305_v38  ;;  %p1068_p0 = pneg %p1067_p12 }
  0x36   : > { %258 = vadd.xlane.f32.xlu1 %v257_v19  ;;  %248 = vadd.xlane.f32.xlu0 %v247_v20  ;;  %v267_v44 = vadd.f32 %v266_v40, %v265_v39  ;;  %v309_v45 = vsel %vm239_vm0, %v1305_v18, -inf  ;;  %v310_v46 = vsel %vm239_vm0, %v227_v25, -inf  ;;  %v270_v47 = vsel %vm239_vm0, %v1327_v34, 0.0  ;;  %p1074_p5 = por %p1073_p3, %p1072_p1 }
  0x37   : > { %v271_v48 = vsel %vm239_vm0, %v229_v41, 0.0  ;;  %v230_v49 = vcombine.high %v1338_v42, %v1338_v42  ;;  %v311_v50 = vmax.f32 %v309_v45, %v310_v46  ;;  %v314_v52 = vsel %vm239_vm0, %v1316_v26, -inf }
  0x38   : > { %v272_v51 = vadd.f32 %v271_v48, %v270_v47  ;;  %v315_v53 = vsel %vm239_vm0, %v228_v33, -inf  ;;  %v275_v54 = vsel %vm239_vm0, %v1338_v42, 0.0  ;;  %v319_v58 = vsel %vm239_vm0, %v1327_v34, -inf  ;;  %p1075_p6 = pnand %p1074_p5, %p1068_p0 }
  0x39   : > { %v276_v55 = vsel %vm239_vm0, %v230_v49, 0.0  ;;  %v316_v56 = vmax.f32 %v314_v52, %v315_v53  ;;  %v320_v59 = vsel %vm239_vm0, %v229_v41, -inf  ;;  %v324_v60 = vsel %vm239_vm0, %v1338_v42, -inf }
  0x3a   : > { %297 = vmax.xlane.f32.xlu1 %v296_v27  ;;  %292 = vmax.xlane.f32.xlu0 %v291_v28  ;;  %v277_v57 = vadd.f32 %v276_v55, %v275_v54  ;;  %v325_v61 = vsel %vm239_vm0, %v230_v49, -inf  ;;  %v321_v62 = vmax.f32 %v319_v58, %v320_v59  ;;  %v1150_v3 = vmov 0.0  }
  0x3b   : > { %v326_v63 = vmax.f32 %v324_v60, %v325_v61  ;;  %941 = vmatprep.subr.mxu0 %v1150_v3  ;;  %946 = vmatprep.subr.mxu1 %v1150_v3  ;;  %v339_v9 = vlaneseq  ;;  %vm375_vm3 = vcmask 1042434   ;;  %vm377_vm4 = vcmask 1043459   ;;  %v329_v60 = vld [vmem:[%s1467_s1] sm:$0xf] }
  0x3c   : > { %943 = vmatprep.mubr.msk.f32.mxu0 %vm1151_vm1, %v1150_v3  ;;  %948 = vmatprep.mubr.msk.f32.mxu1 %vm1151_vm1, %v1150_v3  ;;  %vm379_vm5 = vcmask 1044484   ;;  %vm381_vm6 = vcmask 1045509   ;;  %vm383_vm7 = vcmask 1046534   ;;  %vm385_vm8 = vcmask 1047559  }
  0x3d   : > { %v340_v12 = vand.u32 127, %v339_v9  ;;  %v1366_v13 = vshrl.u32 %v339_v9, 7  ;;  %vm388_vm9 = vcmask 64512   ;;  %vm583_vm10 = vcmask 31744  }
  0x3e   : > { %302 = vmax.xlane.f32.xlu1 %v301_v35  ;;  %263 = vadd.xlane.f32.xlu0 %v262_v36 }
  0x3f   : > { %v343_v17 = vsub.s32 %v340_v12, %v1366_v13 }
  0x42   : > { %307 = vmax.xlane.f32.xlu1 %v306_v43  ;;  %268 = vadd.xlane.f32.xlu0 %v267_v44 }
  0x46   : > { %312 = vmax.xlane.f32.xlu1 %v311_v50  ;;  %273 = vadd.xlane.f32.xlu0 %v272_v51 }
  0x4a   : > { %317 = vmax.xlane.f32.xlu1 %v316_v56  ;;  %278 = vadd.xlane.f32.xlu0 %v277_v57 }
  0x4e   : > { %322 = vmax.xlane.f32.xlu0 %v321_v62  ;;  %327 = vmax.xlane.f32.xlu1 %v326_v63 }
  0xbb   : > { %v254_v4 = vpop.xlane.xlu1 %253  ;;  %v244_v5 = vpop.xlane.xlu0 %243 }
  0xbc   : > { %v281_v19 = vmul.f32 0.00390625, %v244_v5  ;;  %v283_v21 = vmul.f32 0.00390625, %v254_v4 }
  0xbe   : > { %v344_v24 = vrot.slane %v281_v19, %v343_v17  ;;  %v352_v30 = vrot.slane %v283_v21, %v343_v17 }
  0xbf   : > { %v259_v6 = vpop.xlane.xlu1 %258  ;;  %v249_v8 = vpop.xlane.xlu0 %248 }
  0xc0   : > { %v282_v14 = vmul.f32 0.00390625, %v249_v8  ;;  %v284_v25 = vmul.f32 0.00390625, %v259_v6 }
  0xc2   : > { %v348_v20 = vrot.slane %v282_v14, %v343_v17  ;;  %v356_v33 = vrot.slane %v284_v25, %v343_v17 }
  0xc3   : > { %v298_v10 = vpop.xlane.xlu1 %297  ;;  %v293_v11 = vpop.xlane.xlu0 %292 }
  0xc4   : > { %v374_v28 = vsel %vm373_vm2, %v348_v20, %v344_v24  ;;  %v478_v36 = vrot.slane %v298_v10, %v343_v17  ;;  %v474_v37 = vrot.slane %v293_v11, %v343_v17  ;;  %v668_v24 = vsub.s32 0, %v1366_v13 }
  0xc5   : > { %v376_v38 = vsel %vm375_vm3, %v352_v30, %v374_v28  ;;  %v696_v30 = vsub.s32 4, %v1366_v13 }
  0xc6   : > { %v378_v47 = vsel %vm377_vm4, %v356_v33, %v376_v38  ;;  %v503_v50 = vsel %vm373_vm2, %v478_v36, %v474_v37  ;;  %v689_v33 = vsub.s32 3, %v1366_v13  ;;  %v703_v38 = vsub.s32 5, %v1366_v13 }
  0xc7   : > { %v303_v15 = vpop.xlane.xlu1 %302  ;;  %v264_v16 = vpop.xlane.xlu0 %263 }
  0xc8   : > { %v285_v27 = vmul.f32 0.00390625, %v264_v16  ;;  %v482_v40 = vrot.slane %v303_v15, %v343_v17 }
  0xca   : > { %v360_v39 = vrot.slane %v285_v27, %v343_v17  ;;  %v504_v53 = vsel %vm375_vm3, %v482_v40, %v503_v50  ;;  %v717_v40 = vsub.s32 7, %v1366_v13 }
  0xcb   : > { %v308_v22 = vpop.xlane.xlu1 %307  ;;  %v269_v23 = vpop.xlane.xlu0 %268 }
  0xcc   : > { %v286_v29 = vmul.f32 0.00390625, %v269_v23  ;;  %v486_v43 = vrot.slane %v308_v22, %v343_v17  ;;  %v380_v51 = vsel %vm379_vm5, %v360_v39, %v378_v47  ;;  %v675_v23 = vsub.s32 1, %v1366_v13 }
  0xce   : > { %v364_v41 = vrot.slane %v286_v29, %v343_v17  ;;  %v505_v56 = vsel %vm377_vm4, %v486_v43, %v504_v53  ;;  %v682_v29 = vsub.s32 2, %v1366_v13  ;;  %v1152_v43 = vmov 839922192  }
  0xcf   : > { %v313_v31 = vpop.xlane.xlu1 %312  ;;  %v274_v32 = vpop.xlane.xlu0 %273 }
  0xd0   : > { %v287_v35 = vmul.f32 0.00390625, %v274_v32  ;;  %v490_v48 = vrot.slane %v313_v31, %v343_v17  ;;  %v382_v55 = vsel %vm381_vm6, %v364_v41, %v380_v51 }
  0xd2   : > { %v368_v44 = vrot.slane %v287_v35, %v343_v17  ;;  %v506_v61 = vsel %vm379_vm5, %v490_v48, %v505_v56  ;;  %v710_v35 = vsub.s32 6, %v1366_v13 }
  0xd3   : > { %v318_v45 = vpop.xlane.xlu1 %317  ;;  %v279_v46 = vpop.xlane.xlu0 %278 }
  0xd4   : > { %v288_v49 = vmul.f32 0.00390625, %v279_v46  ;;  %v494_v52 = vrot.slane %v318_v45, %v343_v17  ;;  %v384_v59 = vsel %vm383_vm7, %v368_v44, %v382_v55  ;;  %v731_v44 = vunpack.c.l.s4 %v1152_v43 }
  0xd6   : > { %v372_v54 = vrot.slane %v288_v49, %v343_v17  ;;  %v507_v5 = vsel %vm381_vm6, %v494_v52, %v506_v61  ;;  %v732_v45 = vunpack.c.0.s8 %v731_v44 }
  0xd7   : > { %v323_v57 = vpop.xlane.xlu0 %322  ;;  %v328_v58 = vpop.xlane.xlu1 %327 }
  0xd8   : > { %v498_v62 = vrot.slane %v323_v57, %v343_v17  ;;  %v502_v63 = vrot.slane %v328_v58, %v343_v17  ;;  %v386_v4 = vsel %vm385_vm8, %v372_v54, %v384_v59  ;;  %v330_v17 = vld [vmem:[%s1468_s2] sm:$0xff]  ;;  %v735_v46 = vsub.s32 %v732_v45, %v1366_v13 }
  0xd9   : > { %942 = vmatpush3.msra.mxu0 %v386_v4 }
  0xda   : > { %944 = vmatmul.mubr.msk.f32.vlgmr.msra.gmra.mxu0 %vm388_vm9, %v329_v60  ;;  %v508_v6 = vsel %vm383_vm7, %v498_v62, %v507_v5  ;;  %951 = vmatprep.subr.mxu0 %v1150_v3 }
  0xdb   : > { %v509_v8 = vsel %vm385_vm8, %v502_v63, %v508_v6  ;;  %953 = vmatprep.mubr.msk.f32.mxu0 %vm1151_vm1, %v1150_v3 }
  0xdc   : > { %947 = vmatpush3.msra.mxu1 %v509_v8 }
  0xdd   : > { %949 = vmatmul.mubr.msk.f32.vlgmr.msra.gmra.mxu1 %vm388_vm9, %v329_v60 }
 0x19a   : > { %v458_v9 = vpop.f32.mrf.mxu0 }
 0x19b   : > { %v462_v10 = vmax.f32 %v458_v9, 0.0 }
 0x19c   : > { %v945_v11 = vpop.f32.mrf.mxu0 }
 0x19d   : > { %v577_v12 = vpop.f32.mrf.mxu1 }
 0x19e   : > { %v581_v14 = vmax.f32 %v577_v12, 0.0 }
 0x19f   : > { %v950_v15 = vpop.f32.mrf.mxu1 }
 0x1a0   : > { %v582_v16 = vadd.f32 %v581_v14, %v462_v10 }
 0x1a2   : > { %952 = vmatpush3.msk.msra.mxu0 %vm239_vm0, %v582_v16 }
 0x1a3   : > { %954 = vmatmul.mubr.msk.f32.vlgmr.msra.gmra.mxu0 %vm583_vm10, %v330_v17 }
 0x263   : > { %v656_v19 = vpop.f32.mrf.mxu0 }
 0x264   : > { %v927_v20 = vmul.f32 -1.442695, %v656_v19 }
 0x265   : > { %v955_v3 = vpop.f32.mrf.mxu0 }
 0x266   : > { %1033 = vpow2.f32 %v927_v20 }
 0x273   : > { %v1034_v21 = vpop.eup %1033 }
 0x274   : > { %v663_v22 = vadd.f32 1.0, %v1034_v21 }
 0x276   : > { %1035 = vrcp.f32 %v663_v22 }
 0x283   : > { %v1036_v25 = vpop.eup %1035 }
 0x284   : > { %v676_v27 = vrot.slane %v1036_v25, %v675_v23  ;;  %v669_v28 = vrot.slane %v1036_v25, %v668_v24  ;;  %v683_v31 = vrot.slane %v1036_v25, %v682_v29  ;;  %v697_v32 = vrot.slane %v1036_v25, %v696_v30 }
 0x285   : > { %v690_v36 = vrot.slane %v1036_v25, %v689_v33  ;;  %v711_v37 = vrot.slane %v1036_v25, %v710_v35  ;;  %v704_v39 = vrot.slane %v1036_v25, %v703_v38  ;;  %v718_v41 = vrot.slane %v1036_v25, %v717_v40 }
 0x286   : > { %678 = vbcast.lane.b32.xlu1 %v676_v27, 256  ;;  %671 = vbcast.lane.b32.xlu0 %v669_v28, 256 }
 0x28a   : > { %685 = vbcast.lane.b32.xlu1 %v683_v31, 256  ;;  %699 = vbcast.lane.b32.xlu0 %v697_v32, 256 }
 0x28e   : > { %692 = vbcast.lane.b32.xlu1 %v690_v36, 256  ;;  %713 = vbcast.lane.b32.xlu0 %v711_v37, 256 }
 0x292   : > { %706 = vbcast.lane.b32.xlu1 %v704_v39, 256 }
 0x296   : > { %720 = vbcast.lane.b32.xlu1 %v718_v41, 256 }
 0x2f8   : > { %v679_v47 = vpop.permute.xlu1 %678  ;;  %v672_v48 = vpop.permute.xlu0 %671 }
 0x2f9   : > { %v743_v49 = vrot.slane %v679_v47, %v735_v46  ;;  %v736_v50 = vrot.slane %v672_v48, %v735_v46 }
 0x2fb   : > { %v795_v51 = vmul.f32 %v743_v49, %v1290_v7  ;;  %v794_v52 = vmul.f32 %v736_v50, %v1276_v1 }
 0x2fc   : > { %v686_v53 = vpop.permute.xlu1 %685  ;;  %v700_v54 = vpop.permute.xlu0 %699 }
 0x2fd   : > { %803 = vst [vmem:[%s206_s8 + $0x8] sm:$0xff] %v795_v51  ;;  %802 = vst [vmem:[%s206_s8] sm:$0xff] %v794_v52  ;;  %v750_v55 = vrot.slane %v686_v53, %v735_v46  ;;  %v764_v56 = vrot.slane %v700_v54, %v735_v46 }
 0x2ff   : > { %v796_v57 = vmul.f32 %v750_v55, %v1273_v0  ;;  %v798_v13 = vmul.f32 %v764_v56, %v1305_v18 }
 0x300   : > { %v693_v58 = vpop.permute.xlu1 %692  ;;  %v714_v59 = vpop.permute.xlu0 %713 }
 0x301   : > { %804 = vst [vmem:[%s206_s8 + $0x10] sm:$0xff] %v796_v57  ;;  %806 = vst [vmem:[%s206_s8 + $0x20] sm:$0xff] %v798_v13  ;;  %v757_v7 = vrot.slane %v693_v58, %v735_v46  ;;  %v778_v60 = vrot.slane %v714_v59, %v735_v46 }
 0x303   : > { %v797_v1 = vmul.f32 %v757_v7, %v1279_v2  ;;  %v800_v61 = vmul.f32 %v778_v60, %v1327_v34 }
 0x304   : > { %v707_v62 = vpop.permute.xlu1 %706 }
 0x305   : > { %805 = vst [vmem:[%s206_s8 + $0x18] sm:$0xff] %v797_v1  ;;  %808 = vst [vmem:[%s206_s8 + $0x30] sm:$0xff] %v800_v61  ;;  %v771_v63 = vrot.slane %v707_v62, %v735_v46 }
 0x307   : > { %v799_v0 = vmul.f32 %v771_v63, %v1316_v26 }
 0x308   : > { %v721_v18 = vpop.permute.xlu1 %720 }
 0x309   : > { %807 = vst [vmem:[%s206_s8 + $0x28] sm:$0xff] %v799_v0  ;;  %v785_v2 = vrot.slane %v721_v18, %v735_v46 }
 0x30b   : > { %v801_v34 = vmul.f32 %v785_v2, %v1338_v42 }
 0x30d   : > { %809 = vst [vmem:[%s206_s8 + $0x38] sm:$0xff] %v801_v34 }
 0x30e   : > { %1078 = shalt.err (!%p1075_p6)
}
 0x30f   : > { %s1079_s30 = scalar_lea.hbm %s1417_s19, 1024  ;;  %s1083_s5 = scalar_lea.hbm %s1469_s3, 2048 }
 0x310   : > { %p1080_p7 = scmp.ne.s32.totalorder %s1417_s19, %s1079_s30  ;;  %p1084_p13 = scmp.lt.s32.totalorder %s1417_s19, %s1469_s3 }
 0x311   : > { %p1085_p2 = scmp.lt.s32.totalorder %s1083_s5, %s1079_s30 }
 0x312   : > { %p1081_p10 = pnand %p1080_p7, %p1227_p9 }
 0x313   : > { %p1086_p8 = por %p1085_p2, %p1084_p13 }
 0x314   : > { %p1082_p4 = pneg %p1081_p10 }
 0x316   : > { %p1087_p12 = pnand %p1086_p8, %p1082_p4 }
 0x318   : > { %1090 = shalt.err (!%p1087_p12)
}
 0x319   : > { %s1154_s8 = smov 128   ;;  %s1155_s10 = smov 8  }
 0x31a   : > { %958 = dma.vmem_to_hbm [thread:$0]  (%p1227_p9), %s1412_s9, 1024, %s1417_s19, %s811_s21, %s1154_s8, %s1154_s8, %s1155_s10  }
 0x31b PF: > { %s841_s11 = sand.u32 1, %s1125_s12   ;;  %p1475_p0 = scmp.ge.s32.totalorder %s1145_s17, 2 }
 0x31c   : > { %s842_s18 = scalar_lea.sflag [#allocation4], %s841_s11 }
 0x31d   : > { %p965_p1 = pnand %p1475_p0, %p1234_p11 }
 0x31f   : > { %p966_p3 = pneg %p965_p1 }
 0x321   : > { %1120 = dma.done.wait (%p966_p3), %s842_s18, 1024  }
 0x322   : > { %1122 = vsyncadd (%p966_p3), %s842_s18, 4294966272  ;;  %s19_s17 = sadd.s32 1, %s1145_s17   ;;  %s1476_s12 = smov %s1129_s13 }
 0x323   : > { %p16_p5 = scmp.ge.s32.totalorder %s19_s17, 4   ;;  %s1477_s13 = smov %s1133_s14 }
 0x324   : > { %s1478_s14 = smov %s1232_s26  ;;  %s1479_s15 = smov %s1141_s16 }
 0x325   : > { %s1480_s16 = smov %s1482_s20  ;;  %18 = sbr.rel (!%p16_p5) target bundleno = 6 (0x6), region = 77 }
 0x32a   :  { %847 = vsyncpa [#allocation3], 1 }
 0x32b   :  { %849 = vsyncpa [#allocation3 + $0x1], 1 }
 0x32c   :  { %850 = vsyncpa [#allocation4], 1 }
 0x32d   :  { %852 = vsyncpa [#allocation4 + $0x1], 1 }

</bundles_post_ra>
